<compile_context>
chip_gen: v7x
topology: tpu7x:2x2x1
jax: 0.10.0
libtpu: 0.0.40
codegen_flags: <defaults>
</compile_context>

<pallas_src>
import functools

import jax
import jax.numpy as jnp
from jax.experimental import pallas as pl
from jax.experimental.pallas import tpu as pltpu


def _round_up(x, m):
    return (x + m - 1) // m * m


def _decoder_kernel(emb_ref, h0_ref, c0_ref, w_cat_ref, b_ref, w_fc_ref, b_fc_ref,
                    pred_ref, h_out_ref, c_out_ref, xh_ref, *, L, D, H):
    """Single time-step multi-layer LSTM + output projection.

    emb_ref  : (Bp, D)       layer-0 input (padded embedded tokens), compute dtype
    h0_ref   : (L, Bp, H)    previous hidden states (f32)
    c0_ref   : (L, Bp, H)    previous cell states   (f32)
    w_cat_ref: (L, D+H, 4H)  fused, pre-transposed [W_ih^T ; W_hh^T], compute dtype
    b_ref    : (L, 1, 4H)    combined bias (b_ih + b_hh), f32
    w_fc_ref : (H, O)        pre-transposed fc weight, compute dtype
    b_fc_ref : (1, O)        fc bias, f32
    xh_ref   : (Bp, D+H)     VMEM scratch holding fused [x | h_prev], compute dtype
    """
    cdtype = xh_ref.dtype
    xh_ref[:, :D] = emb_ref[...]          # layer-0 x slot (already padded to D)

    h = None
    for l in range(L):                    # static unroll over layers
        xh_ref[:, D:] = h0_ref[l].astype(cdtype)

        # One fused MXU matmul per layer: (Bp, D+H) @ (D+H, 4H) -> (Bp, 4H), f32 acc.
        gates = (jnp.dot(xh_ref[...], w_cat_ref[l],
                         preferred_element_type=jnp.float32)
                 + b_ref[l])

        # Two full-width EUP passes over the whole gates vreg, then slice.
        # PyTorch gate order along 4H: input, forget, cell(g), output.
        sig = jax.nn.sigmoid(gates)
        tah = jnp.tanh(gates)
        i = sig[:, 0 * H:1 * H]
        f = sig[:, 1 * H:2 * H]
        g = tah[:, 2 * H:3 * H]
        o = sig[:, 3 * H:4 * H]

        c = f * c0_ref[l] + i * g
        h = o * jnp.tanh(c)

        h_out_ref[l] = h
        c_out_ref[l] = c

        if l + 1 < L:
            # Feed h to the next layer's x slot. Columns [H:D] may hold stale
            # data, but the matching weight rows are zero-padded, so they
            # contribute nothing to the next dot.
            xh_ref[:, :H] = h.astype(cdtype)

    # Output projection: (Bp, H) @ (H, O) -> (Bp, O).
    pred_ref[...] = (jnp.dot(h.astype(cdtype), w_fc_ref[...],
                             preferred_element_type=jnp.float32)
                     + b_fc_ref[...])


def pack_decoder_params(params, *, L, E, H, O, compute_dtype=jnp.float32):
    """One-time packing of the LSTM/fc parameters (done at parameter-load time,
    NOT per forward call): transpose, fuse [W_ih ; W_hh], fuse biases, pad."""
    D = max(E, H)
    w_cat = jnp.zeros((L, D + H, 4 * H), dtype=jnp.float32)
    b_cat = jnp.zeros((L, 1, 4 * H), dtype=jnp.float32)
    for l in range(L):
        w_ih = params[f"w_ih_{l}"]                       # (4H, in_dim)
        w_hh = params[f"w_hh_{l}"]                       # (4H, H)
        in_dim = w_ih.shape[1]
        w_cat = w_cat.at[l, :in_dim, :].set(w_ih.T)      # rows [in_dim:D] stay zero
        w_cat = w_cat.at[l, D:, :].set(w_hh.T)
        b_cat = b_cat.at[l, 0].set(params[f"b_ih_{l}"] + params[f"b_hh_{l}"])
    return {
        "embedding": params["embedding"].astype(compute_dtype),   # (O, E)
        "w_cat": w_cat.astype(compute_dtype),                     # (L, D+H, 4H)
        "b_cat": b_cat,                                           # (L, 1, 4H) f32
        "w_fc_t": params["w_fc"].T.astype(compute_dtype),         # (H, O)
        "b_fc": params["b_fc"].reshape(1, O).astype(jnp.float32), # (1, O)
    }


@functools.partial(jax.jit, static_argnames=("L", "E", "H", "O"))
def decoder_forward(tokens, h0, c0, packed, *, L, E, H, O):
    """tokens: (B,) int32; h0/c0: (L,B,H) f32; packed: from pack_decoder_params.
    Returns (pred (B,O), h (L,B,H), c (L,B,H))."""
    B = tokens.shape[0]
    D = max(E, H)
    Bp = _round_up(max(B, 1), 8)          # pad batch to a full sublane group
    cdtype = packed["w_cat"].dtype

    # Embedding lookup (plain-JAX glue): x.unsqueeze(1) -> embed -> squeeze(1)
    emb = packed["embedding"][tokens]                               # (B, E)
    emb_pad = jnp.zeros((Bp, D), dtype=cdtype).at[:B, :E].set(emb.astype(cdtype))
    h0_pad = jnp.zeros((L, Bp, H), jnp.float32).at[:, :B].set(h0)
    c0_pad = jnp.zeros((L, Bp, H), jnp.float32).at[:, :B].set(c0)

    kernel = functools.partial(_decoder_kernel, L=L, D=D, H=H)
    vmem = pl.BlockSpec(memory_space=pltpu.MemorySpace.VMEM)

    out_shapes = (
        jax.ShapeDtypeStruct((Bp, O), jnp.float32),
        jax.ShapeDtypeStruct((L, Bp, H), jnp.float32),
        jax.ShapeDtypeStruct((L, Bp, H), jnp.float32),
    )

    # TODO(synk): for autoregressive decoding, hoist the step loop into the
    # kernel (grid over steps, weights/state resident in VMEM) instead of one
    # pallas_call per token.
    pred, h_out, c_out = pl.pallas_call(
        kernel,
        out_shape=out_shapes,
        in_specs=[vmem] * 7,
        out_specs=(vmem, vmem, vmem),
        scratch_shapes=[pltpu.VMEM((Bp, D + H), cdtype)],
        input_output_aliases={1: 1, 2: 2},   # h/c state updated in place
    )(emb_pad, h0_pad, c0_pad, packed["w_cat"], packed["b_cat"],
      packed["w_fc_t"], packed["b_fc"])

    return pred[:B], h_out[:, :B], c_out[:, :B]


def decoder_reference(tokens, h0, c0, params, *, L, E, H, O):
    """Pure-JAX f32 reference mirroring torch semantics (for verification)."""
    x = params["embedding"][tokens]
    hs, cs = [], []
    for l in range(L):
        w_ih, w_hh = params[f"w_ih_{l}"], params[f"w_hh_{l}"]
        b_ih, b_hh = params[f"b_ih_{l}"], params[f"b_hh_{l}"]
        gates = x @ w_ih.T + b_ih + h0[l] @ w_hh.T + b_hh
        i = jax.nn.sigmoid(gates[:, 0 * H:1 * H])
        f = jax.nn.sigmoid(gates[:, 1 * H:2 * H])
        g = jnp.tanh(gates[:, 2 * H:3 * H])
        o = jax.nn.sigmoid(gates[:, 3 * H:4 * H])
        c = f * c0[l] + i * g
        h = o * jnp.tanh(c)
        hs.append(h)
        cs.append(c)
        x = h
    pred = x @ params["w_fc"].T + params["b_fc"]
    return pred, jnp.stack(hs), jnp.stack(cs)


if __name__ == "__main__":
    # Module hyper-params: Decoder(output_dim, embed_dim, hidden_dim, num_layers)
    O, E, H, L = 64, 16, 32, 2
    B = 4

    key = jax.random.PRNGKey(0)
    keys = jax.random.split(key, 16)

    params = {
        "embedding": 0.1 * jax.random.normal(keys[0], (O, E), jnp.float32),
        "w_fc": 0.1 * jax.random.normal(keys[1], (O, H), jnp.float32),
        "b_fc": 0.1 * jax.random.normal(keys[2], (O,), jnp.float32),
    }
    for l in range(L):
        in_dim = E if l == 0 else H
        params[f"w_ih_{l}"] = 0.1 * jax.random.normal(keys[3 + 4 * l], (4 * H, in_dim), jnp.float32)
        params[f"w_hh_{l}"] = 0.1 * jax.random.normal(keys[4 + 4 * l], (4 * H, H), jnp.float32)
        params[f"b_ih_{l}"] = 0.1 * jax.random.normal(keys[5 + 4 * l], (4 * H,), jnp.float32)
        params[f"b_hh_{l}"] = 0.1 * jax.random.normal(keys[6 + 4 * l], (4 * H,), jnp.float32)

    tokens = jax.random.randint(keys[12], (B,), 0, O, dtype=jnp.int32)
    h0 = jax.random.normal(keys[13], (L, B, H), jnp.float32)
    c0 = jax.random.normal(keys[14], (L, B, H), jnp.float32)

    pred_r, h_r, c_r = decoder_reference(tokens, h0, c0, params, L=L, E=E, H=H, O=O)

    # f32 compute path: must match the reference tightly.
    packed_f32 = pack_decoder_params(params, L=L, E=E, H=H, O=O, compute_dtype=jnp.float32)
    pred, h1, c1 = decoder_forward(tokens, h0, c0, packed_f32, L=L, E=E, H=H, O=O)
    jax.block_until_ready((pred, h1, c1))
    assert jnp.allclose(pred, pred_r, atol=1e-5, rtol=1e-5)
    assert jnp.allclose(h1, h_r, atol=1e-5, rtol=1e-5)
    assert jnp.allclose(c1, c_r, atol=1e-5, rtol=1e-5)

    # bf16 MXU-operand path (f32 accumulate + f32 gate math): loose tolerance.
    packed_bf16 = pack_decoder_params(params, L=L, E=E, H=H, O=O, compute_dtype=jnp.bfloat16)
    pred_b, h_b, c_b = decoder_forward(tokens, h0, c0, packed_bf16, L=L, E=E, H=H, O=O)
    jax.block_until_ready((pred_b, h_b, c_b))
    assert jnp.allclose(pred_b, pred_r, atol=3e-2, rtol=3e-2)
    assert jnp.allclose(h_b, h_r, atol=3e-2, rtol=3e-2)
    assert jnp.allclose(c_b, c_r, atol=3e-2, rtol=3e-2)

    print("KERNEL_OK")
</pallas_src>

<mosaic_0001>
module attributes {stable_mosaic.version = 11 : i64} {
  func.func @_decoder_kernel(%arg0: memref<8x32xf32, #tpu.memory_space<vmem>>, %arg1: memref<2x8x32xf32, #tpu.memory_space<vmem>>, %arg2: memref<2x8x32xf32, #tpu.memory_space<vmem>>, %arg3: memref<2x64x128xf32, #tpu.memory_space<vmem>>, %arg4: memref<2x1x128xf32, #tpu.memory_space<vmem>>, %arg5: memref<32x64xf32, #tpu.memory_space<vmem>>, %arg6: memref<1x64xf32, #tpu.memory_space<vmem>>, %arg7: memref<8x64xf32, #tpu.memory_space<vmem>>, %arg8: memref<2x8x32xf32, #tpu.memory_space<vmem>>, %arg9: memref<2x8x32xf32, #tpu.memory_space<vmem>>, %arg10: memref<8x64xf32, #tpu.memory_space<vmem>>) attributes {dimension_semantics = [], scalar_prefetch = 0 : i64, scratch_operands = 1 : i64, tpu.core_type = #tpu.core_type<tc>} {
    %c0 = arith.constant 0 : index
    %c0_0 = arith.constant 0 : index
    %0 = vector.load %arg0[%c0, %c0_0] : memref<8x32xf32, #tpu.memory_space<vmem>>, vector<8x32xf32>
    %c0_1 = arith.constant 0 : index
    %c0_2 = arith.constant 0 : index
    %1 = vector.load %arg10[%c0_1, %c0_2] : memref<8x64xf32, #tpu.memory_space<vmem>>, vector<8x32xf32>
    tpu.vector_store %arg10[%c0_1, %c0_2], %0 {strides = array<i32>} : memref<8x64xf32, #tpu.memory_space<vmem>>, vector<8x32xf32>,
    %c0_3 = arith.constant 0 : index
    %c0_4 = arith.constant 0 : index
    %c0_5 = arith.constant 0 : index
    %2 = vector.load %arg1[%c0_3, %c0_4, %c0_5] : memref<2x8x32xf32, #tpu.memory_space<vmem>>, vector<1x8x32xf32>
    %3 = vector.shape_cast %2 : vector<1x8x32xf32> to vector<8x32xf32>
    %c0_6 = arith.constant 0 : index
    %c32 = arith.constant 32 : index
    %4 = vector.load %arg10[%c0_6, %c32] : memref<8x64xf32, #tpu.memory_space<vmem>>, vector<8x32xf32>
    tpu.vector_store %arg10[%c0_6, %c32], %3 {strides = array<i32>} : memref<8x64xf32, #tpu.memory_space<vmem>>, vector<8x32xf32>,
    %c0_7 = arith.constant 0 : index
    %c0_8 = arith.constant 0 : index
    %5 = vector.load %arg10[%c0_7, %c0_8] : memref<8x64xf32, #tpu.memory_space<vmem>>, vector<8x64xf32>
    %c0_9 = arith.constant 0 : index
    %c0_10 = arith.constant 0 : index
    %c0_11 = arith.constant 0 : index
    %6 = vector.load %arg3[%c0_9, %c0_10, %c0_11] : memref<2x64x128xf32, #tpu.memory_space<vmem>>, vector<1x64x128xf32>
    %7 = vector.shape_cast %6 : vector<1x64x128xf32> to vector<64x128xf32>
    %cst = arith.constant dense<0.000000e+00> : vector<8x128xf32>
    %8 = tpu.matmul %5, %7, %cst {dimension_numbers = #tpu.dot_dimension_numbers<[1], [0], [0], [1], [0, 0, 1, 1], [], []>} : vector<8x64xf32>, vector<64x128xf32>, vector<8x128xf32> -> vector<8x128xf32>
    %c0_12 = arith.constant 0 : index
    %c0_13 = arith.constant 0 : index
    %c0_14 = arith.constant 0 : index
    %9 = vector.load %arg4[%c0_12, %c0_13, %c0_14] : memref<2x1x128xf32, #tpu.memory_space<vmem>>, vector<1x1x128xf32>
    %10 = vector.shape_cast %9 : vector<1x1x128xf32> to vector<1x128xf32>
    %11 = vector.broadcast %10 : vector<1x128xf32> to vector<8x128xf32>
    %12 = arith.addf %8, %11 : vector<8x128xf32>
    %13 = arith.negf %12 : vector<8x128xf32>
    %14 = math.exp %13 : vector<8x128xf32>
    %cst_15 = arith.constant 1.000000e+00 : f32
    %15 = vector.broadcast %cst_15 : f32 to vector<8x128xf32>
    %16 = arith.addf %15, %14 : vector<8x128xf32>
    %17 = arith.divf %15, %16 : vector<8x128xf32>
    %18 = math.tanh %12 : vector<8x128xf32>
    %19 = vector.extract_strided_slice %17 {offsets = [0, 0], sizes = [8, 32], strides = [1, 1]} : vector<8x128xf32> to vector<8x32xf32>
    %20 = vector.extract_strided_slice %17 {offsets = [0, 32], sizes = [8, 32], strides = [1, 1]} : vector<8x128xf32> to vector<8x32xf32>
    %21 = vector.extract_strided_slice %18 {offsets = [0, 64], sizes = [8, 32], strides = [1, 1]} : vector<8x128xf32> to vector<8x32xf32>
    %22 = vector.extract_strided_slice %17 {offsets = [0, 96], sizes = [8, 32], strides = [1, 1]} : vector<8x128xf32> to vector<8x32xf32>
    %c0_16 = arith.constant 0 : index
    %c0_17 = arith.constant 0 : index
    %c0_18 = arith.constant 0 : index
    %23 = vector.load %arg2[%c0_16, %c0_17, %c0_18] : memref<2x8x32xf32, #tpu.memory_space<vmem>>, vector<1x8x32xf32>
    %24 = vector.shape_cast %23 : vector<1x8x32xf32> to vector<8x32xf32>
    %25 = arith.mulf %20, %24 : vector<8x32xf32>
    %26 = arith.mulf %19, %21 : vector<8x32xf32>
    %27 = arith.addf %25, %26 : vector<8x32xf32>
    %28 = math.tanh %27 : vector<8x32xf32>
    %29 = arith.mulf %22, %28 : vector<8x32xf32>
    %c0_19 = arith.constant 0 : index
    %c0_20 = arith.constant 0 : index
    %c0_21 = arith.constant 0 : index
    %30 = vector.load %arg8[%c0_19, %c0_20, %c0_21] : memref<2x8x32xf32, #tpu.memory_space<vmem>>, vector<1x8x32xf32>
    %31 = vector.shape_cast %30 : vector<1x8x32xf32> to vector<8x32xf32>
    %32 = vector.shape_cast %29 : vector<8x32xf32> to vector<1x8x32xf32>
    tpu.vector_store %arg8[%c0_19, %c0_20, %c0_21], %32 {strides = array<i32>} : memref<2x8x32xf32, #tpu.memory_space<vmem>>, vector<1x8x32xf32>,
    %c0_22 = arith.constant 0 : index
    %c0_23 = arith.constant 0 : index
    %c0_24 = arith.constant 0 : index
    %33 = vector.load %arg9[%c0_22, %c0_23, %c0_24] : memref<2x8x32xf32, #tpu.memory_space<vmem>>, vector<1x8x32xf32>
    %34 = vector.shape_cast %33 : vector<1x8x32xf32> to vector<8x32xf32>
    %35 = vector.shape_cast %27 : vector<8x32xf32> to vector<1x8x32xf32>
    tpu.vector_store %arg9[%c0_22, %c0_23, %c0_24], %35 {strides = array<i32>} : memref<2x8x32xf32, #tpu.memory_space<vmem>>, vector<1x8x32xf32>,
    %c0_25 = arith.constant 0 : index
    %c0_26 = arith.constant 0 : index
    %36 = vector.load %arg10[%c0_25, %c0_26] : memref<8x64xf32, #tpu.memory_space<vmem>>, vector<8x32xf32>
    tpu.vector_store %arg10[%c0_25, %c0_26], %29 {strides = array<i32>} : memref<8x64xf32, #tpu.memory_space<vmem>>, vector<8x32xf32>,
    %c1 = arith.constant 1 : index
    %c0_27 = arith.constant 0 : index
    %c0_28 = arith.constant 0 : index
    %37 = vector.load %arg1[%c1, %c0_27, %c0_28] : memref<2x8x32xf32, #tpu.memory_space<vmem>>, vector<1x8x32xf32>
    %38 = vector.shape_cast %37 : vector<1x8x32xf32> to vector<8x32xf32>
    %c0_29 = arith.constant 0 : index
    %c32_30 = arith.constant 32 : index
    %39 = vector.load %arg10[%c0_29, %c32_30] : memref<8x64xf32, #tpu.memory_space<vmem>>, vector<8x32xf32>
    tpu.vector_store %arg10[%c0_29, %c32_30], %38 {strides = array<i32>} : memref<8x64xf32, #tpu.memory_space<vmem>>, vector<8x32xf32>,
    %c0_31 = arith.constant 0 : index
    %c0_32 = arith.constant 0 : index
    %40 = vector.load %arg10[%c0_31, %c0_32] : memref<8x64xf32, #tpu.memory_space<vmem>>, vector<8x64xf32>
    %c1_33 = arith.constant 1 : index
    %c0_34 = arith.constant 0 : index
    %c0_35 = arith.constant 0 : index
    %41 = vector.load %arg3[%c1_33, %c0_34, %c0_35] : memref<2x64x128xf32, #tpu.memory_space<vmem>>, vector<1x64x128xf32>
    %42 = vector.shape_cast %41 : vector<1x64x128xf32> to vector<64x128xf32>
    %cst_36 = arith.constant dense<0.000000e+00> : vector<8x128xf32>
    %43 = tpu.matmul %40, %42, %cst_36 {dimension_numbers = #tpu.dot_dimension_numbers<[1], [0], [0], [1], [0, 0, 1, 1], [], []>} : vector<8x64xf32>, vector<64x128xf32>, vector<8x128xf32> -> vector<8x128xf32>
    %c1_37 = arith.constant 1 : index
    %c0_38 = arith.constant 0 : index
    %c0_39 = arith.constant 0 : index
    %44 = vector.load %arg4[%c1_37, %c0_38, %c0_39] : memref<2x1x128xf32, #tpu.memory_space<vmem>>, vector<1x1x128xf32>
    %45 = vector.shape_cast %44 : vector<1x1x128xf32> to vector<1x128xf32>
    %46 = vector.broadcast %45 : vector<1x128xf32> to vector<8x128xf32>
    %47 = arith.addf %43, %46 : vector<8x128xf32>
    %48 = arith.negf %47 : vector<8x128xf32>
    %49 = math.exp %48 : vector<8x128xf32>
    %cst_40 = arith.constant 1.000000e+00 : f32
    %50 = vector.broadcast %cst_40 : f32 to vector<8x128xf32>
    %51 = arith.addf %50, %49 : vector<8x128xf32>
    %52 = arith.divf %50, %51 : vector<8x128xf32>
    %53 = math.tanh %47 : vector<8x128xf32>
    %54 = vector.extract_strided_slice %52 {offsets = [0, 0], sizes = [8, 32], strides = [1, 1]} : vector<8x128xf32> to vector<8x32xf32>
    %55 = vector.extract_strided_slice %52 {offsets = [0, 32], sizes = [8, 32], strides = [1, 1]} : vector<8x128xf32> to vector<8x32xf32>
    %56 = vector.extract_strided_slice %53 {offsets = [0, 64], sizes = [8, 32], strides = [1, 1]} : vector<8x128xf32> to vector<8x32xf32>
    %57 = vector.extract_strided_slice %52 {offsets = [0, 96], sizes = [8, 32], strides = [1, 1]} : vector<8x128xf32> to vector<8x32xf32>
    %c1_41 = arith.constant 1 : index
    %c0_42 = arith.constant 0 : index
    %c0_43 = arith.constant 0 : index
    %58 = vector.load %arg2[%c1_41, %c0_42, %c0_43] : memref<2x8x32xf32, #tpu.memory_space<vmem>>, vector<1x8x32xf32>
    %59 = vector.shape_cast %58 : vector<1x8x32xf32> to vector<8x32xf32>
    %60 = arith.mulf %55, %59 : vector<8x32xf32>
    %61 = arith.mulf %54, %56 : vector<8x32xf32>
    %62 = arith.addf %60, %61 : vector<8x32xf32>
    %63 = math.tanh %62 : vector<8x32xf32>
    %64 = arith.mulf %57, %63 : vector<8x32xf32>
    %c1_44 = arith.constant 1 : index
    %c0_45 = arith.constant 0 : index
    %c0_46 = arith.constant 0 : index
    %65 = vector.load %arg8[%c1_44, %c0_45, %c0_46] : memref<2x8x32xf32, #tpu.memory_space<vmem>>, vector<1x8x32xf32>
    %66 = vector.shape_cast %65 : vector<1x8x32xf32> to vector<8x32xf32>
    %67 = vector.shape_cast %64 : vector<8x32xf32> to vector<1x8x32xf32>
    tpu.vector_store %arg8[%c1_44, %c0_45, %c0_46], %67 {strides = array<i32>} : memref<2x8x32xf32, #tpu.memory_space<vmem>>, vector<1x8x32xf32>,
    %c1_47 = arith.constant 1 : index
    %c0_48 = arith.constant 0 : index
    %c0_49 = arith.constant 0 : index
    %68 = vector.load %arg9[%c1_47, %c0_48, %c0_49] : memref<2x8x32xf32, #tpu.memory_space<vmem>>, vector<1x8x32xf32>
    %69 = vector.shape_cast %68 : vector<1x8x32xf32> to vector<8x32xf32>
    %70 = vector.shape_cast %62 : vector<8x32xf32> to vector<1x8x32xf32>
    tpu.vector_store %arg9[%c1_47, %c0_48, %c0_49], %70 {strides = array<i32>} : memref<2x8x32xf32, #tpu.memory_space<vmem>>, vector<1x8x32xf32>,
    %c0_50 = arith.constant 0 : index
    %c0_51 = arith.constant 0 : index
    %71 = vector.load %arg5[%c0_50, %c0_51] : memref<32x64xf32, #tpu.memory_space<vmem>>, vector<32x64xf32>
    %cst_52 = arith.constant dense<0.000000e+00> : vector<8x64xf32>
    %72 = tpu.matmul %64, %71, %cst_52 {dimension_numbers = #tpu.dot_dimension_numbers<[1], [0], [0], [1], [0, 0, 1, 1], [], []>} : vector<8x32xf32>, vector<32x64xf32>, vector<8x64xf32> -> vector<8x64xf32>
    %c0_53 = arith.constant 0 : index
    %c0_54 = arith.constant 0 : index
    %73 = vector.load %arg6[%c0_53, %c0_54] : memref<1x64xf32, #tpu.memory_space<vmem>>, vector<1x64xf32>
    %74 = vector.broadcast %73 : vector<1x64xf32> to vector<8x64xf32>
    %75 = arith.addf %72, %74 : vector<8x64xf32>
    %c0_55 = arith.constant 0 : index
    %c0_56 = arith.constant 0 : index
    %76 = vector.load %arg7[%c0_55, %c0_56] : memref<8x64xf32, #tpu.memory_space<vmem>>, vector<8x64xf32>
    tpu.vector_store %arg7[%c0_55, %c0_56], %75 {strides = array<i32>} : memref<8x64xf32, #tpu.memory_space<vmem>>, vector<8x64xf32>,
    return
  }
}

</mosaic_0001>

<bundles_post_ra>
// kernel: decoder_forward.1
= control target key start
LH: loop header
LB: loop body
LE: loop exit
PB: predicated region body
PF: predicated region fallthrough
CT: control target
= control target key end

     0   :  { %vm30_vm0 = vcmask 261120   ;;  %v550_v1 = vmov 0.0|0.0   ;;  %s551_s15 = smov 32   ;;  %vm552_vm1 = vmmov 0   ;;  %v553_v8 = vmov 0.0   ;;  %s554_s12 = smov 64   ;;  %s746_s1 = inlined_call_operand.vmem [shape: f32[2,8,32], index: 1, kind: input, shape index: {}, may-alias: {1,8}]   ;;  %s747_s3 = inlined_call_operand.vmem [shape: f32[2,64,128], index: 3, kind: input, shape index: {}]   ;;  %s748_s0 = inlined_call_operand.vmem [shape: f32[8,32], index: 0, kind: input, shape index: {}]   ;;  %s749_s2 = inlined_call_operand.vmem [shape: f32[2,8,32], index: 2, kind: input, shape index: {}, may-alias: {2,9}]   ;;  %s750_s4 = inlined_call_operand.vmem [shape: f32[2,1,128], index: 4, kind: input, shape index: {}]   ;;  %s751_s8 = inlined_call_operand.vmem [shape: f32[2,8,32], index: 8, kind: output, shape index: {1}, may-alias: {1,8}]   ;;  %s752_s5 = inlined_call_operand.vmem [shape: f32[32,64], index: 5, kind: input, shape index: {}]   ;;  %s753_s9 = inlined_call_operand.vmem [shape: f32[2,8,32], index: 9, kind: output, shape index: {2}, may-alias: {2,9}]   ;;  %s754_s6 = inlined_call_operand.vmem [shape: f32[1,64], index: 6, kind: input, shape index: {}]   ;;  %s755_s7 = inlined_call_operand.vmem [shape: f32[8,64], index: 7, kind: output, shape index: {0}]  }
   0x1   :  { %v32_v0 = vld [vmem:[%s746_s1] sm:$0xff]  ;;  %498 = vmatprep.subr.bf16.mxu0 %v550_v1  ;;  %v41_v3 = vld [vmem:[%s747_s3 + $0x8] sm:$0xff]  ;;  %510 = vmatprep.subr.bf16.mxu1 %v550_v1  ;;  %v42_v5 = vld [vmem:[%s747_s3 + $0x10] sm:$0xff]  ;;  %vm37_vm2 = vcmask 523520   ;;  %vm55_vm3 = vcmask 523264   ;;  %s555_s22 = smov 96  }
   0x2   :  { %v40_v2 = vld [vmem:[%s747_s3] sm:$0xff]  ;;  %34 = vrot.lane.b32.xlu0 %v32_v0, %s551_s15  ;;  %v43_v6 = vld [vmem:[%s747_s3 + $0x18] sm:$0xff]  ;;  %465 = vmatprep.mubr.msk.f32.mxu0 %vm552_vm1, %v553_v8  ;;  %v45_v12 = vld [vmem:[%s747_s3 + $0x28] sm:$0xff] }
   0x3   :  { %v499_v4 = vpack.c.bf16 %v41_v3, %v40_v2  ;;  %v29_v7 = vld [vmem:[%s748_s0] sm:$0xff]  ;;  %484 = vmatprep.mubr.msk.f32.mxu1 %vm552_vm1, %v553_v8  ;;  %v502_v9 = vpack.c.bf16 %v43_v6, %v42_v5  ;;  %v46_v14 = vld [vmem:[%s747_s3 + $0x30] sm:$0xff]  ;;  %v47_v15 = vld [vmem:[%s747_s3 + $0x38] sm:$0xff] }
   0x4   :  { %31 = vst.msk [vmem:[#allocation2] sm:$0xff] %vm30_vm0, %v29_v7  ;;  %v136_v10 = vld [vmem:[%s749_s2] sm:$0xff]  ;;  %v508_v16 = vpack.c.bf16 %v47_v15, %v46_v14  ;;  %v410_v35 = vld [vmem:[%s747_s3 + $0x48] sm:$0xff]  ;;  %v411_v37 = vld [vmem:[%s747_s3 + $0x50] sm:$0xff] }
   0x5   :  { %500 = vmatpush3.bf16.msra.mxu0 %v499_v4  ;;  %v44_v11 = vld [vmem:[%s747_s3 + $0x20] sm:$0xff]  ;;  %138 = vrot.lane.b32.xlu1 %v136_v10, %s551_s15  ;;  %v412_v38 = vld [vmem:[%s747_s3 + $0x58] sm:$0xff]  ;;  %v408_v41 = vld [vmem:[%s746_s1 + $0x8] sm:$0xff] }
   0x6   :  { %501 = vmatprep.subr.bf16.mxu0 %v550_v1  ;;  %v505_v13 = vpack.c.bf16 %v45_v12, %v44_v11  ;;  %v405_v19 = vld [vmem:[%s750_s4] ss:$0 sm:$0xff]  ;;  %v514_v39 = vpack.c.bf16 %v412_v38, %v411_v37  ;;  %v414_v43 = vld [vmem:[%s747_s3 + $0x68] sm:$0xff]  ;;  %v415_v45 = vld [vmem:[%s747_s3 + $0x70] sm:$0xff] }
   0x7   :  { %v409_v34 = vld [vmem:[%s747_s3 + $0x40] sm:$0xff]  ;;  %v416_v46 = vld [vmem:[%s747_s3 + $0x78] sm:$0xff]  ;;  %v421_v48 = vld [vmem:[%s749_s2 + $0x8] sm:$0xff] }
   0x8   :  { %v511_v36 = vpack.c.bf16 %v410_v35, %v409_v34  ;;  %v413_v42 = vld [vmem:[%s747_s3 + $0x60] sm:$0xff]  ;;  %v520_v47 = vpack.c.bf16 %v416_v46, %v415_v45  ;;  %v310_v7 = vld [vmem:[%s752_s5 + $0x8] sm:$0xff]  ;;  %v312_v10 = vld [vmem:[%s752_s5 + $0x18] sm:$0xff] }
   0x9   :  { %503 = vmatpush3.bf16.msra.mxu0 %v502_v9  ;;  %v517_v44 = vpack.c.bf16 %v414_v43, %v413_v42  ;;  %v418_v54 = vld [vmem:[%s750_s4 + $0x1] ss:$0 sm:$0xff] }
   0xa   :  { %504 = vmatprep.subr.bf16.mxu0 %v550_v1  ;;  %512 = vmatpush3.bf16.msra.mxu1 %v511_v36  ;;  %v309_v6 = vld [vmem:[%s752_s5] sm:$0xff] }
   0xb   :  { %513 = vmatprep.subr.bf16.mxu1 %v550_v1  ;;  %v523_v9 = vpack.c.bf16 %v310_v7, %v309_v6 }
   0xd   :  { %506 = vmatpush3.bf16.msra.mxu0 %v505_v13 }
   0xe   :  { %507 = vmatprep.subr.bf16.mxu0 %v550_v1  ;;  %515 = vmatpush3.bf16.msra.mxu1 %v514_v39 }
   0xf   :  { %516 = vmatprep.subr.bf16.mxu1 %v550_v1 }
  0x11   :  { %509 = vmatpush3.bf16.msra.mxu0 %v508_v16 }
  0x12   :  { %522 = vmatprep.subr.bf16.mxu0 %v550_v1  ;;  %518 = vmatpush3.bf16.msra.mxu1 %v517_v44 }
  0x13   :  { %519 = vmatprep.subr.bf16.mxu1 %v550_v1 }
  0x16   :  { %521 = vmatpush3.bf16.msra.mxu1 %v520_v47 }
  0x74   :  { %v35_v17 = vpop.permute.xlu0 %34 }
  0x75   :  { %38 = vst.msk [vmem:[#allocation2] sm:$0xff] %vm37_vm2, %v35_v17  ;;  %v424_v17 = vld [vmem:[%s754_s6] ss:$0 sm:$0xff] }
  0x77   :  { %v139_v30 = vpop.permute.xlu1 %138 }
  0x7c   :  { %v39_v18 = vld [vmem:[#allocation2] sm:$0xff] }
  0x7d   :  { %466 = vmatmul.mubr.msk.f32.vlgmr.msra.gmra.mrb[0].mxu0 %vm55_vm3, %v39_v18 }
  0x7e   :  { %495 = vmatprep.mubr.msk.f32.mxu0 %vm552_vm1, %v553_v8  ;;  %v311_v8 = vld [vmem:[%s752_s5 + $0x10] sm:$0xff]  ;;  %524 = vmatpush3.bf16.msra.mxu0 %v523_v9 }
  0x7f   :  { %v526_v11 = vpack.c.bf16 %v312_v10, %v311_v8  ;;  %525 = vmatprep.subr.bf16.mxu0 %v550_v1 }
  0x82   :  { %527 = vmatpush3.bf16.msra.mxu0 %v526_v11 }
 0x150   :  { %v125_v20 = vpop.f32.mrb[0].mxu0 }
 0x151   :  { %v126_v21 = vadd.f32 %v405_v19, %v125_v20  ;;  %v467_v22 = vpop.f32.mrb[1].mxu0 }
 0x153   :  { %534 = vtanh.f32 %v126_v21  ;;  %v407_v24 = vmul.f32 -1.442695, %v126_v21 }
 0x155   :  { %536 = vpow2.f32 %v407_v24 }
 0x15d   :  { %v535_v23 = vpop.eup %534 }
 0x15e   :  { %143 = vrot.lane.b32.xlu0 %v535_v23, %s554_s12 }
 0x15f   :  { %v537_v25 = vpop.eup %536 }
 0x160   :  { %v132_v26 = vadd.f32 1.0, %v537_v25 }
 0x162   :  { %538 = vrcp.f32 %v132_v26 }
 0x16c   :  { %v539_v27 = vpop.eup %538 }
 0x16d   :  { %v141_v31 = vmul.f32 %v539_v27, %v139_v30 }
 0x1d0   :  { %v144_v28 = vpop.permute.xlu0 %143 }
 0x1d1   :  { %v146_v29 = vmul.f32 %v539_v27, %v144_v28 }
 0x1d3   :  { %148 = vrot.lane.b32.xlu1 %v146_v29, %s551_s15 }
 0x245   :  { %v149_v32 = vpop.permute.xlu1 %148 }
 0x246   :  { %v658_v33 = vadd.f32 %v149_v32, %v141_v31 }
 0x248   :  { %540 = vtanh.f32 %v658_v33 }
 0x252   :  { %v541_v40 = vpop.eup %540 }
 0x253   :  { %154 = vrot.lane.b32.xlu0 %v541_v40, %s554_s12 }
 0x257   :  { %172 = vrot.lane.b32.xlu0 %v408_v41, %s551_s15 }
 0x25b   :  { %277 = vrot.lane.b32.xlu0 %v421_v48, %s551_s15 }
 0x2c5   :  { %v155_v49 = vpop.permute.xlu0 %154 }
 0x2c6   :  { %v157_v50 = vmul.f32 %v539_v27, %v155_v49 }
 0x2c8   :  { %159 = vrot.lane.b32.xlu1 %v157_v50, %s551_s15 }
 0x2c9   :  { %v173_v51 = vpop.permute.xlu0 %172 }
 0x2cd   :  { %v278_v2 = vpop.permute.xlu0 %277 }
 0x33a   :  { %v160_v52 = vpop.permute.xlu1 %159 }
 0x33b   :  { %162 = vst.msk [vmem:[%s751_s8] sm:$0xff] %vm30_vm0, %v160_v52  ;;  %168 = vst.msk [vmem:[#allocation2] sm:$0xff] %vm30_vm0, %v160_v52 }
 0x33c   :  { %175 = vst.msk [vmem:[#allocation2] sm:$0xff] %vm37_vm2, %v173_v51 }
 0x343   :  { %v176_v53 = vld [vmem:[#allocation2] sm:$0xff] }
 0x344   :  { %485 = vmatmul.mubr.msk.f32.vlgmr.msra.gmra.mrb[0].mxu1 %vm55_vm3, %v176_v53 }
 0x417   :  { %v263_v55 = vpop.f32.mrb[0].mxu1 }
 0x418   :  { %v264_v56 = vadd.f32 %v418_v54, %v263_v55  ;;  %v486_v57 = vpop.f32.mrb[1].mxu1 }
 0x41a   :  { %542 = vtanh.f32 %v264_v56  ;;  %v420_v59 = vmul.f32 -1.442695, %v264_v56 }
 0x41c   :  { %544 = vpow2.f32 %v420_v59 }
 0x424   :  { %v543_v58 = vpop.eup %542 }
 0x425   :  { %282 = vrot.lane.b32.xlu1 %v543_v58, %s554_s12 }
 0x426   :  { %v545_v60 = vpop.eup %544 }
 0x427   :  { %v270_v61 = vadd.f32 1.0, %v545_v60 }
 0x429   :  { %546 = vrcp.f32 %v270_v61 }
 0x433   :  { %v547_v62 = vpop.eup %546 }
 0x434   :  { %v280_v3 = vmul.f32 %v547_v62, %v278_v2 }
 0x497   :  { %v283_v63 = vpop.permute.xlu1 %282 }
 0x498   :  { %v285_v0 = vmul.f32 %v547_v62, %v283_v63 }
 0x49a   :  { %287 = vrot.lane.b32.xlu1 %v285_v0, %s551_s15 }
 0x50c   :  { %v288_v4 = vpop.permute.xlu1 %287 }
 0x50d   :  { %v290_v5 = vadd.f32 %v288_v4, %v280_v3 }
 0x50f   :  { %548 = vtanh.f32 %v290_v5 }
 0x519   :  { %v549_v12 = vpop.eup %548 }
 0x51a   :  { %293 = vrot.lane.b32.xlu0 %v549_v12, %s554_s12 }
 0x51e   :  { %164 = vrot.lane.b32.xlu0 %v658_v33, %s555_s22 }
 0x58c   :  { %v294_v13 = vpop.permute.xlu0 %293 }
 0x58d   :  { %v296_v14 = vmul.f32 %v547_v62, %v294_v13 }
 0x58f   :  { %298 = vrot.lane.b32.xlu1 %v296_v14, %s551_s15 }
 0x590   :  { %v165_v15 = vpop.permute.xlu0 %164 }
 0x591   :  { %167 = vst.msk [vmem:[%s753_s9] sm:$0xff] %vm30_vm0, %v165_v15 }
 0x593   :  { %304 = vrot.lane.b32.xlu1 %v290_v5, %s555_s22 }
 0x601   :  { %v299_v16 = vpop.permute.xlu1 %298 }
 0x602   :  { %422 = vst.msk [vmem:[%s751_s8 + $0x8] sm:$0xff] %vm30_vm0, %v299_v16  ;;  %496 = vmatmul.mubr.msk.f32.vlgmr.msra.gmra.mrb[2].mxu0 %vm30_vm0, %v299_v16 }
 0x605   :  { %v305_v1 = vpop.permute.xlu1 %304 }
 0x606   :  { %423 = vst.msk [vmem:[%s753_s9 + $0x8] sm:$0xff] %vm30_vm0, %v305_v1 }
 0x6d5   :  { %v388_v18 = vpop.f32.mrb[2].mxu0 }
 0x6d6   :  { %v389_v19 = vadd.f32 %v424_v17, %v388_v18  ;;  %v497_v20 = vpop.f32.mrb[3].mxu0 }
 0x6d8   :  { %392 = vst.msk [vmem:[%s755_s7] sm:$0xff] %vm55_vm3, %v389_v19 }

</bundles_post_ra>
